<compile_context>
chip_gen: v5e
topology: v5e:2x2
jax: 0.10.0
libtpu: 0.0.40
codegen_flags: <defaults>
</compile_context>

<pallas_src>
import functools
import math

import jax
import jax.numpy as jnp
from jax.experimental import pallas as pl
from jax.experimental.pallas import tpu as pltpu

# Full-precision f32 matmuls for the plain-JAX reference, so the f32-path check is tight.
jax.config.update("jax_default_matmul_precision", "highest")

_NEG_MASKED = -1e30        # finite "masked" score: no NaN even for fully-masked rows


def _vmem_limit_bytes():
    """Generation-aware scoped-VMEM limit: ~75% of physical, capped at 96 MiB."""
    cap = 128 * 1024 * 1024
    try:
        info = pltpu.get_tpu_info()
        cap = int(getattr(info, "vmem_capacity_bytes", cap))
    except Exception:
        pass
    return min((cap * 3) // 4, 96 * 1024 * 1024)


def _pick_tile(dim, cap, steps=(128, 8)):
    """Largest tile <= cap that exactly divides dim, preferring the given alignments."""
    if dim <= cap:
        return dim
    for step in steps:
        t = (cap // step) * step
        while t >= step:
            if dim % t == 0:
                return t
            t -= step
    return dim   # no aligned divisor: fall back to the full (untiled) dimension


# ---------------------------------------------------------------------------
# Tiled linear kernel:  y = x @ w + b     (f32 accumulation, K-reduction axis)
# ---------------------------------------------------------------------------

def _linear_kernel(x_ref, w_ref, b_ref, o_ref, acc_ref):
    kk = pl.program_id(2)

    @pl.when(kk == 0)
    def _():
        acc_ref[...] = jnp.zeros_like(acc_ref)

    acc_ref[...] += jnp.dot(x_ref[...], w_ref[...],
                            preferred_element_type=jnp.float32)

    @pl.when(kk == pl.num_programs(2) - 1)
    def _():
        o_ref[...] = (acc_ref[...] + b_ref[...].astype(jnp.float32)).astype(o_ref.dtype)


def pallas_linear(x, w, b, *, out_dtype=None, tm_cap=512, tn_cap=1024, tk_cap=2048):
    """x: [N, Din], w: [Din, Dout], b: [Dout] -> [N, Dout].

    Inputs should already be in the desired compute dtype (bf16 on the perf path);
    accumulation is always f32 in VMEM scratch."""
    n, din = x.shape
    dout = w.shape[1]
    out_dtype = out_dtype or x.dtype
    vmem = _vmem_limit_bytes()

    tm = _pick_tile(n, tm_cap, steps=(8,))
    tn = _pick_tile(dout, tn_cap, steps=(128, 8))
    tkk = _pick_tile(din, tk_cap, steps=(128, 8))
    n_i, n_j, n_k = n // tm, dout // tn, din // tkk

    # Weight-residency fix: choose the loop order that minimizes HBM traffic.
    # cols-outer  => W read once,      X read n_j times
    # rows-outer  => X read once,      W read n_i times
    # (residency only materializes when n_k == 1, i.e. Din fits in one stripe)
    w_bytes = din * dout
    x_bytes = n * din
    cols_outer = (w_bytes + n_j * x_bytes) <= (x_bytes + n_i * w_bytes)
    if cols_outer:
        grid = (n_j, n_i, n_k)
        x_map = lambda j, i, kk: (i, kk)
        w_map = lambda j, i, kk: (kk, j)
        b_map = lambda j, i, kk: (0, j)
        o_map = lambda j, i, kk: (i, j)
    else:
        grid = (n_i, n_j, n_k)
        x_map = lambda i, j, kk: (i, kk)
        w_map = lambda i, j, kk: (kk, j)
        b_map = lambda i, j, kk: (0, j)
        o_map = lambda i, j, kk: (i, j)

    cost = pl.CostEstimate(
        flops=2 * n * din * dout,
        transcendentals=0,
        bytes_accessed=(x.dtype.itemsize * n * din
                        + w.dtype.itemsize * (din * dout + dout)
                        + jnp.dtype(out_dtype).itemsize * n * dout))

    return pl.pallas_call(
        _linear_kernel,
        out_shape=jax.ShapeDtypeStruct((n, dout), out_dtype),
        grid_spec=pltpu.PrefetchScalarGridSpec(
            num_scalar_prefetch=0,
            grid=grid,
            in_specs=[
                pl.BlockSpec((tm, tkk), x_map),
                pl.BlockSpec((tkk, tn), w_map),
                pl.BlockSpec((1, tn), b_map),
            ],
            out_specs=pl.BlockSpec((tm, tn), o_map),
            scratch_shapes=[pltpu.VMEM((tm, tn), jnp.float32)]),
        compiler_params=pltpu.CompilerParams(
            dimension_semantics=("parallel", "parallel", "arbitrary"),
            vmem_limit_bytes=vmem),
        cost_estimate=cost,
    )(x, w, b.reshape(1, dout))


# ---------------------------------------------------------------------------
# Flash-style attention kernel (online softmax over kv tiles, all heads per step)
# Q/K/V are read in the natural projection layout [S, B, (1|3), H, d_k]:
# no wrapper transposes and no in-kernel transposes (per-head NT matmuls instead).
# ---------------------------------------------------------------------------

def _flash_attn_kernel(*refs, scale, causal, has_mask, heads, approx):
    if has_mask:
        q_ref, k_ref, v_ref, m_ref, o_ref, m_sc, l_sc, acc_sc = refs
    else:
        q_ref, k_ref, v_ref, o_ref, m_sc, l_sc, acc_sc = refs
        m_ref = None

    tq = q_ref.shape[0]
    tk = k_ref.shape[0]
    d_k = q_ref.shape[-1]
    qi = pl.program_id(1)
    ki = pl.program_id(2)
    n_kv = pl.num_programs(2)

    @pl.when(ki == 0)
    def _():
        m_sc[...] = jnp.full(m_sc.shape, -jnp.inf, m_sc.dtype)
        l_sc[...] = jnp.zeros(l_sc.shape, l_sc.dtype)
        acc_sc[...] = jnp.zeros(acc_sc.shape, acc_sc.dtype)

    nt_dims = (((1,), (1,)), ((), ()))     # contract d_k of both operands (A @ B^T)

    def compute():
        q_all = q_ref[:, 0, 0]             # [tq, H, d_k]
        k_all = k_ref[:, 0, 0]             # [tk, H, d_k]
        v_all = v_ref[:, 0, 0]             # [tk, H, d_k]

        if causal:
            # in-kernel mask: no [B,Sq,Sk] tensor is ever read from HBM
            rows = jax.lax.broadcasted_iota(jnp.int32, (tq, tk), 0) + qi * tq
            cols = jax.lax.broadcasted_iota(jnp.int32, (tq, tk), 1) + ki * tk
            keep = rows >= cols
        elif has_mask:
            keep = m_ref[0] != 0           # int8 [tq, tk]
        else:
            keep = None

        for h in range(heads):
            q_h = q_all[:, h, :]           # [tq, d_k]
            k_h = k_all[:, h, :]           # [tk, d_k]
            v_h = v_all[:, h, :]           # [tk, d_k]

            s = jax.lax.dot_general(q_h, k_h, nt_dims,
                                    preferred_element_type=jnp.float32) * scale
            if keep is not None:
                s = jnp.where(keep, s, _NEG_MASKED)

            # online softmax over the key axis (per head)
            m_prev = m_sc[h]                                       # [tq, 1]
            m_new = jnp.maximum(m_prev, jnp.max(s, axis=-1, keepdims=True))
            alpha = jnp.exp(m_prev - m_new)
            p = jnp.exp(s - m_new)                                 # [tq, tk]
            l_sc[h] = alpha * l_sc[h] + jnp.sum(p, axis=-1, keepdims=True)
            pv = jnp.dot(p.astype(v_h.dtype), v_h,
                         preferred_element_type=jnp.float32)       # [tq, d_k]
            lo, hi = h * d_k, (h + 1) * d_k
            acc_sc[:, lo:hi] = alpha * acc_sc[:, lo:hi] + pv
            m_sc[h] = m_new

    if causal:
        # skip kv tiles that lie entirely above the diagonal (~half the work)
        pl.when(ki * tk <= qi * tq + (tq - 1))(compute)
    else:
        compute()

    @pl.when(ki == n_kv - 1)
    def _():
        # per-head normalization in VMEM scratch, then ONE lane-dense [tq, H*d_k] store
        for h in range(heads):
            lo, hi = h * d_k, (h + 1) * d_k
            if approx:
                inv = pl.reciprocal(l_sc[h], approx=True)          # EUP slot
            else:
                inv = 1.0 / l_sc[h]                                # exact (f32 path)
            acc_sc[:, lo:hi] = acc_sc[:, lo:hi] * inv
        o_ref[:, 0, 0, :] = acc_sc[...].astype(o_ref.dtype)


def pallas_attention(q, k, v, mask_i8, scale, *, heads, causal, sel):
    """q: [Sq, B, Gq, H, d_k], k/v: [Sk, B, Gk, H, d_k] (G in {1,3}; sel picks the
    q/k/v slot along G — lets the fused-QKV output be consumed without a split copy).
    mask_i8: [B, Sq, Sk] int8 or None.  Returns [Sq, B, 1, H*d_k] (seq-major)."""
    Sq, B = q.shape[0], q.shape[1]
    Sk = k.shape[0]
    d_k = q.shape[-1]
    D = heads * d_k
    has_mask = mask_i8 is not None
    approx = q.dtype != jnp.float32

    vmem = _vmem_limit_bytes()
    big_vmem = vmem >= 96 * 1024 * 1024
    tq_cap = 256
    tk_cap = 1024 if big_vmem else 256          # smaller kv tiles on 64 MiB parts (v7x)
    tq = _pick_tile(Sq, tq_cap, steps=(8,))
    tk = _pick_tile(Sk, tk_cap, steps=(128,) if has_mask else (128, 8))
    n_q, n_kv = Sq // tq, Sk // tk

    kernel = functools.partial(_flash_attn_kernel, scale=scale, causal=causal,
                               has_mask=has_mask, heads=heads, approx=approx)

    def q_map(b, i, j):
        return (i, b, sel[0], 0, 0)

    def k_map(b, i, j):
        return (j, b, sel[1], 0, 0)

    def v_map(b, i, j):
        return (j, b, sel[2], 0, 0)

    def o_map(b, i, j):
        return (i, b, 0, 0)

    in_specs = [
        pl.BlockSpec((tq, 1, 1, heads, d_k), q_map),
        pl.BlockSpec((tk, 1, 1, heads, d_k), k_map),
        pl.BlockSpec((tk, 1, 1, heads, d_k), v_map),
    ]
    inputs = [q, k, v]
    if has_mask:
        in_specs.append(pl.BlockSpec((1, tq, tk), lambda b, i, j: (b, i, j)))
        inputs.append(mask_i8)

    itm = q.dtype.itemsize
    cost = pl.CostEstimate(
        flops=4 * B * heads * Sq * Sk * d_k,
        transcendentals=B * heads * Sq * Sk,
        bytes_accessed=itm * B * (Sq * D + 2 * n_q * Sk * D + Sq * D)
        + (B * Sq * Sk if has_mask else 0))

    return pl.pallas_call(
        kernel,
        out_shape=jax.ShapeDtypeStruct((Sq, B, 1, D), q.dtype),
        grid_spec=pltpu.PrefetchScalarGridSpec(
            num_scalar_prefetch=0,
            grid=(B, n_q, n_kv),
            in_specs=in_specs,
            out_specs=pl.BlockSpec((tq, 1, 1, D), o_map),
            scratch_shapes=[
                pltpu.VMEM((heads, tq, 1), jnp.float32),   # running max
                pltpu.VMEM((heads, tq, 1), jnp.float32),   # running denom
                pltpu.VMEM((tq, D), jnp.float32),          # lane-dense accumulator
            ]),
        compiler_params=pltpu.CompilerParams(
            dimension_semantics=("parallel", "parallel", "arbitrary"),
            vmem_limit_bytes=vmem),
        cost_estimate=cost,
    )(*inputs)


# ---------------------------------------------------------------------------
# MultiHeadAttention forward (wrapper around the kernels)
# ---------------------------------------------------------------------------

def init_params(key, d_model, heads):
    """PyTorch-like uniform(-1/sqrt(fan_in), 1/sqrt(fan_in)); weights stored [D_in, D_out]."""
    d_k = d_model // heads
    bound = 1.0 / math.sqrt(d_model)
    keys = jax.random.split(key, 8)
    u = lambda k, shape: jax.random.uniform(k, shape, jnp.float32, -bound, bound)
    return dict(
        wq=u(keys[0], (d_model, heads * d_k)), bq=u(keys[1], (heads * d_k,)),
        wk=u(keys[2], (d_model, heads * d_k)), bk=u(keys[3], (heads * d_k,)),
        wv=u(keys[4], (d_model, heads * d_k)), bv=u(keys[5], (heads * d_k,)),
        wo=u(keys[6], (d_model, d_model)),     bo=u(keys[7], (d_model,)),
    )


def multi_head_attention(params, *, query, key, value, mask=None, heads=4,
                         causal=False, compute_dtype=jnp.bfloat16):
    """query/key/value: [seq_len, batch, d_model]; mask: [Sq or 1, Sk, B or 1].

    If causal=True the mask is generated inside the kernel (mask arg ignored)."""
    S, B, D = query.shape
    Sk = key.shape[0]
    d_k = D // heads
    scale = 1.0 / math.sqrt(d_k)
    out_dtype = query.dtype
    cd = compute_dtype

    def cast(t):
        return t if t.dtype == cd else t.astype(cd)

    if query is key and key is value:
        # Fused QKV: one pass over the activations; output consumed in-place as
        # [S, B, 3, H, d_k] by the attention BlockSpecs (no split copies, no transposes).
        w_qkv = jnp.concatenate([params["wq"], params["wk"], params["wv"]], axis=1)
        b_qkv = jnp.concatenate([params["bq"], params["bk"], params["bv"]])
        qkv = pallas_linear(cast(query).reshape(S * B, D), cast(w_qkv), cast(b_qkv),
                            out_dtype=cd)
        qkv5 = qkv.reshape(S, B, 3, heads, d_k)
        q_arr = k_arr = v_arr = qkv5
        sel = (0, 1, 2)
        Skv = S
    else:
        q2 = pallas_linear(cast(query).reshape(S * B, D), cast(params["wq"]),
                           cast(params["bq"]), out_dtype=cd)
        k2 = pallas_linear(cast(key).reshape(Sk * B, D), cast(params["wk"]),
                           cast(params["bk"]), out_dtype=cd)
        v2 = pallas_linear(cast(value).reshape(Sk * B, D), cast(params["wv"]),
                           cast(params["bv"]), out_dtype=cd)
        q_arr = q2.reshape(S, B, 1, heads, d_k)
        k_arr = k2.reshape(Sk, B, 1, heads, d_k)
        v_arr = v2.reshape(Sk, B, 1, heads, d_k)
        sel = (0, 0, 0)
        Skv = Sk

    if causal or mask is None:
        mask_i8 = None
    else:
        # [Sq|1, Sk, B|1] -> [B, Sq, Sk] int8 (4x less HBM traffic than f32).
        # TODO(synk): support key-only [B,1,Sk] masks without materializing [B,Sq,Sk].
        m = jnp.broadcast_to(mask, (S, Skv, B))
        mask_i8 = jnp.transpose(m, (2, 0, 1)).astype(jnp.int8)

    # Seq-major, lane-dense [S, B, 1, D] — feeds the output projection with no transpose.
    attn_out = pallas_attention(q_arr, k_arr, v_arr, mask_i8, scale,
                                heads=heads, causal=causal, sel=sel)

    y = pallas_linear(attn_out.reshape(S * B, D), cast(params["wo"]), cast(params["bo"]),
                      out_dtype=out_dtype)
    return y.reshape(S, B, D)            # already [seq_len, batch, d_model]


# ---------------------------------------------------------------------------
# Plain-JAX reference (mirrors the PyTorch forward exactly)
# ---------------------------------------------------------------------------

def reference(params, *, query, key, value, mask=None, heads=4):
    S, B, D = query.shape
    d_k = D // heads
    scale = 1.0 / math.sqrt(d_k)

    def project(x, w, b):
        return (x @ w + b).reshape(S, B, heads, d_k)

    q = project(query, params["wq"], params["bq"])
    k = project(key, params["wk"], params["bk"])
    v = project(value, params["wv"], params["bv"])

    scores = jnp.einsum("ibhd,jbhd->ijbh", q, k) * scale
    if mask is not None:
        m = jnp.broadcast_to(mask, (S, S, B))[..., None]          # [Sq, Sk, B, 1]
        scores = jnp.where(m == 0, -jnp.inf, scores)
    attn = jax.nn.softmax(scores, axis=1)
    x = jnp.einsum("ijbh,jbhd->ibhd", attn, v).reshape(S, B, D)
    return x @ params["wo"] + params["bo"]


# ---------------------------------------------------------------------------
# Demo
# ---------------------------------------------------------------------------

if __name__ == "__main__":
    seq_len, batch, d_model, heads = 8, 2, 32, 4

    root = jax.random.PRNGKey(0)
    kp, kq, kk, kv = jax.random.split(root, 4)
    params = init_params(kp, d_model, heads)

    query = jax.random.normal(kq, (seq_len, batch, d_model), jnp.float32)
    key = jax.random.normal(kk, (seq_len, batch, d_model), jnp.float32)
    value = jax.random.normal(kv, (seq_len, batch, d_model), jnp.float32)

    # causal mask in the module's convention: mask[i, j, b] = 1 iff query i sees key j
    causal_mask = jnp.tril(jnp.ones((seq_len, seq_len), jnp.float32))[:, :, None]

    # Case 1: cross-attention, explicit mask tensor (int8 in-kernel), f32 path.
    out1 = multi_head_attention(params, query=query, key=key, value=value,
                                mask=causal_mask, heads=heads,
                                compute_dtype=jnp.float32)
    out1 = jax.block_until_ready(out1)
    ref1 = reference(params, query=query, key=key, value=value,
                     mask=causal_mask, heads=heads)
    assert out1.shape == (seq_len, batch, d_model)
    assert jnp.allclose(out1, ref1, atol=5e-3, rtol=5e-3), "mismatch vs reference (f32 path)"

    # Case 2: self-attention, fused QKV, in-kernel causal mask + tile skipping, bf16 path.
    out2 = multi_head_attention(params, query=query, key=query, value=query,
                                heads=heads, causal=True,
                                compute_dtype=jnp.bfloat16)
    out2 = jax.block_until_ready(out2)
    ref2 = reference(params, query=query, key=query, value=query,
                     mask=causal_mask, heads=heads)
    assert jnp.allclose(out2, ref2, atol=5e-2, rtol=5e-2), "mismatch vs reference (bf16 path)"

    print("KERNEL_OK")
</pallas_src>

<mosaic_0001>
module attributes {stable_mosaic.version = 11 : i64} {
  func.func @_linear_kernel(%arg0: i32, %arg1: i32, %arg2: i32, %arg3: memref<16x32xf32, #tpu.memory_space<vmem>>, %arg4: memref<32x32xf32, #tpu.memory_space<vmem>>, %arg5: memref<1x32xf32, #tpu.memory_space<vmem>>, %arg6: memref<16x32xf32, #tpu.memory_space<vmem>>, %arg7: memref<16x32xf32, #tpu.memory_space<vmem>>) attributes {dimension_semantics = [#tpu.dimension_semantics<parallel>, #tpu.dimension_semantics<parallel>, #tpu.dimension_semantics<arbitrary>], iteration_bounds = array<i64: 1, 1, 1>, scalar_prefetch = 0 : i64, scratch_operands = 1 : i64, tpu.core_type = #tpu.core_type<tc>, window_params = [{transform_indices = @transform_0, window_bounds = array<i64: 16, 32>}, {transform_indices = @transform_1, window_bounds = array<i64: 32, 32>}, {transform_indices = @transform_2, window_bounds = array<i64: 1, 32>}, {transform_indices = @transform_3, window_bounds = array<i64: 16, 32>}]} {
    %c0_i32 = arith.constant 0 : i32
    %0 = arith.cmpi eq, %arg2, %c0_i32 : i32
    %1 = arith.extui %0 : i1 to i32
    %c0_i32_0 = arith.constant 0 : i32
    %2 = arith.cmpi ne, %1, %c0_i32_0 : i32
    scf.if %2 {
      %cst_10 = arith.constant 0.000000e+00 : f32
      %12 = vector.broadcast %cst_10 : f32 to vector<16x32xf32>
      %c0_11 = arith.constant 0 : index
      %c0_12 = arith.constant 0 : index
      %13 = vector.load %arg7[%c0_11, %c0_12] : memref<16x32xf32, #tpu.memory_space<vmem>>, vector<16x32xf32>
      tpu.vector_store %arg7[%c0_11, %c0_12], %12 {strides = array<i32>} : memref<16x32xf32, #tpu.memory_space<vmem>>, vector<16x32xf32>,
    } else {
    }
    %c0 = arith.constant 0 : index
    %c0_1 = arith.constant 0 : index
    %3 = vector.load %arg7[%c0, %c0_1] : memref<16x32xf32, #tpu.memory_space<vmem>>, vector<16x32xf32>
    %c0_2 = arith.constant 0 : index
    %c0_3 = arith.constant 0 : index
    %4 = vector.load %arg3[%c0_2, %c0_3] : memref<16x32xf32, #tpu.memory_space<vmem>>, vector<16x32xf32>
    %c0_4 = arith.constant 0 : index
    %c0_5 = arith.constant 0 : index
    %5 = vector.load %arg4[%c0_4, %c0_5] : memref<32x32xf32, #tpu.memory_space<vmem>>, vector<32x32xf32>
    %cst = arith.constant dense<0.000000e+00> : vector<16x32xf32>
    %6 = tpu.matmul %4, %5, %cst {dimension_numbers = #tpu.dot_dimension_numbers<[1], [0], [0], [1], [0, 0, 1, 1], [], []>, precision = #tpu.contract_precision<fp32>} : vector<16x32xf32>, vector<32x32xf32>, vector<16x32xf32> -> vector<16x32xf32>
    %7 = arith.addf %3, %6 : vector<16x32xf32>
    %c0_6 = arith.constant 0 : index
    %c0_7 = arith.constant 0 : index
    %8 = vector.load %arg7[%c0_6, %c0_7] : memref<16x32xf32, #tpu.memory_space<vmem>>, vector<16x32xf32>
    tpu.vector_store %arg7[%c0_6, %c0_7], %7 {strides = array<i32>} : memref<16x32xf32, #tpu.memory_space<vmem>>, vector<16x32xf32>,
    %c0_i32_8 = arith.constant 0 : i32
    %9 = arith.cmpi eq, %arg2, %c0_i32_8 : i32
    %10 = arith.extui %9 : i1 to i32
    %c0_i32_9 = arith.constant 0 : i32
    %11 = arith.cmpi ne, %10, %c0_i32_9 : i32
    scf.if %11 {
      %c0_10 = arith.constant 0 : index
      %c0_11 = arith.constant 0 : index
      %12 = vector.load %arg7[%c0_10, %c0_11] : memref<16x32xf32, #tpu.memory_space<vmem>>, vector<16x32xf32>
      %c0_12 = arith.constant 0 : index
      %c0_13 = arith.constant 0 : index
      %13 = vector.load %arg5[%c0_12, %c0_13] : memref<1x32xf32, #tpu.memory_space<vmem>>, vector<1x32xf32>
      %14 = vector.broadcast %13 : vector<1x32xf32> to vector<16x32xf32>
      %15 = arith.addf %12, %14 : vector<16x32xf32>
      %c0_14 = arith.constant 0 : index
      %c0_15 = arith.constant 0 : index
      %16 = vector.load %arg6[%c0_14, %c0_15] : memref<16x32xf32, #tpu.memory_space<vmem>>, vector<16x32xf32>
      tpu.vector_store %arg6[%c0_14, %c0_15], %15 {strides = array<i32>} : memref<16x32xf32, #tpu.memory_space<vmem>>, vector<16x32xf32>,
    } else {
    }
    return
  }
  func.func @transform_0(%arg0: i32, %arg1: i32, %arg2: i32) -> (i32, i32) {
    %c0_i32 = arith.constant 0 : i32
    return %arg1, %arg2 : i32, i32
  }
  func.func @transform_1(%arg0: i32, %arg1: i32, %arg2: i32) -> (i32, i32) {
    %c0_i32 = arith.constant 0 : i32
    return %arg2, %arg0 : i32, i32
  }
  func.func @transform_2(%arg0: i32, %arg1: i32, %arg2: i32) -> (i32, i32) {
    %c0_i32 = arith.constant 0 : i32
    %c0_i32_0 = arith.constant 0 : i32
    return %c0_i32, %arg0 : i32, i32
  }
  func.func @transform_3(%arg0: i32, %arg1: i32, %arg2: i32) -> (i32, i32) {
    %c0_i32 = arith.constant 0 : i32
    return %arg1, %arg0 : i32, i32
  }
}

</mosaic_0001>

<bundles_post_ra>
// kernel: tpu_custom_call.1
= control target key start
LH: loop header
LB: loop body
LE: loop exit
PB: predicated region body
PF: predicated region fallthrough
CT: control target
= control target key end

     0   :  { %8 = vsyncpa [#allocation4], 0  ;;  %s497_s0 = inlined_call_operand.hbm [shape: f32[16,32], index: 0, kind: input, shape index: {}]   ;;  %s498_s1 = inlined_call_operand.hbm [shape: f32[32,32], index: 1, kind: input, shape index: {}]   ;;  %s499_s2 = inlined_call_operand.vmem [shape: f32[1,32], index: 2, kind: input, shape index: {}]   ;;  %s500_s3 = inlined_call_operand.hbm [shape: f32[16,32], index: 3, kind: output, shape index: {}]  }
   0x1   :  { %9 = vsyncpa [#allocation7], 0 }
   0x2   :  { %10 = vsyncpa [#allocation5], 0  ;;  %s15_s14 = sshll.u32 %s497_s0, 4  ;;  %s415_s15 = smov [#allocation3]   ;;  %s16_s14 = int_to_ptr.hbm [resolvable:$true] %s15_s14 }
   0x3   :  { %s17_s16 = sshll.u32 %s415_s15, 4  ;;  %s28_s19 = sshll.u32 %s498_s1, 4  ;;  %s18_s16 = int_to_ptr.vmem [resolvable:$true] %s17_s16  ;;  %s29_s19 = int_to_ptr.hbm [resolvable:$true] %s28_s19 }
   0x4   :  { %s416_s20 = smov 128   ;;  %s417_s21 = smov 8  }
   0x5   :  { %23 = dma.hbm_to_vmem [thread:$0]  %s16_s14, 256, %s18_s16, [#allocation4], %s416_s20, %s416_s20, %s417_s21  }
   0x6   :  { %s418_s22 = smov [#allocation6]  }
   0x7   :  { %s30_s23 = sshll.u32 %s418_s22, 4  ;;  %s31_s23 = int_to_ptr.vmem [resolvable:$true] %s30_s23 }
   0x8   :  { %36 = dma.hbm_to_vmem [thread:$0]  %s29_s19, 512, %s31_s23, [#allocation7], %s416_s20, %s416_s20, %s417_s21  }
   0x9   :  { %409 = dma.done.wait [#allocation4], 256  }
   0xa   :  { %410 = vsyncadd [#allocation4], 4294967040 }
   0xb   :  { %411 = dma.done.wait [#allocation7], 512  }
   0xc   :  { %412 = vsyncadd [#allocation7], 4294966784  ;;  %vm51_vm0 = vcmask 261120   ;;  %v61_v0 = vld [vmem:[#allocation6 + $0x18] sm:$0xff]  ;;  %v60_v1 = vld [vmem:[#allocation6 + $0x10] sm:$0xff]  ;;  %v419_v38 = vmov 0.0  }
   0xd   :  { %v59_v2 = vld [vmem:[#allocation6 + $0x8] sm:$0xff]  ;;  %v81_v3 = vand.u32 4294901760, %v61_v0  ;;  %v453_v4 = vand.u32 4294901760, %v60_v1  ;;  %v58_v6 = vld [vmem:[#allocation6] sm:$0xff]  ;;  %v57_v7 = vld [vmem:[#allocation3 + $0x8] sm:$0xff]  ;;  %52 = vst.msk [vmem:[#allocation2] sm:$0xff] %vm51_vm0, %v419_v38 }
   0xe   :  { %v455_v5 = vand.u32 4294901760, %v59_v2  ;;  %v56_v8 = vld [vmem:[#allocation3] sm:$0xff]  ;;  %v457_v9 = vand.u32 4294901760, %v58_v6  ;;  %v67_v10 = vsel %vm51_vm0, %v57_v7, 0  ;;  %53 = vst.msk [vmem:[#allocation2 + $0x8] sm:$0xff] %vm51_vm0, %v419_v38  ;;  %s420_s24 = smov [#allocation8]  }
   0xf   :  { %v64_v11 = vsel %vm51_vm0, %v56_v8, 0  ;;  %322 = vmatpush.msra.mxu2 %v81_v3  ;;  %v119_v12 = vsub.f32 %v61_v0, %v81_v3  ;;  %v461_v13 = vand.u32 4294901760, %v67_v10  ;;  %v125_v14 = vsub.f32 %v60_v1, %v453_v4  ;;  %82 = vmatpush.msra.mxu0 %v81_v3  ;;  %v336_v0 = vld [vmem:[%s499_s2] ss:$0 sm:$0xff]  ;;  %s306_s25 = sshll.u32 %s420_s24, 4  ;;  %s308_s28 = sshll.u32 %s500_s3, 4  ;;  %s307_s25 = int_to_ptr.vmem [resolvable:$true] %s306_s25  ;;  %s309_s28 = int_to_ptr.hbm [resolvable:$true] %s308_s28 }
  0x10   :  { %v131_v15 = vsub.f32 %v59_v2, %v455_v5  ;;  %v137_v16 = vsub.f32 %v58_v6, %v457_v9  ;;  %v89_v17 = vand.u32 4294901760, %v64_v11 }
  0x11   :  { %323 = vmatpush.msra.mxu2 %v453_v4  ;;  %v120_v18 = vand.u32 4294901760, %v119_v12  ;;  %v98_v19 = vsub.f32 %v67_v10, %v461_v13  ;;  %v126_v20 = vand.u32 4294901760, %v125_v14  ;;  %84 = vmatpush.msra.mxu0 %v453_v4 }
  0x12   :  { %v132_v21 = vand.u32 4294901760, %v131_v15  ;;  %v138_v22 = vand.u32 4294901760, %v137_v16  ;;  %v90_v23 = vsub.f32 %v64_v11, %v89_v17 }
  0x13   :  { %324 = vmatpush.msra.mxu2 %v455_v5  ;;  %v121_v24 = vsub.f32 %v119_v12, %v120_v18  ;;  %v99_v25 = vand.u32 4294901760, %v98_v19  ;;  %v127_v26 = vsub.f32 %v125_v14, %v126_v20  ;;  %86 = vmatpush.msra.mxu0 %v455_v5 }
  0x14   :  { %v133_v27 = vsub.f32 %v131_v15, %v132_v21  ;;  %v91_v28 = vand.u32 4294901760, %v90_v23  ;;  %v139_v32 = vsub.f32 %v137_v16, %v138_v22  ;;  %v54_v52 = vld [vmem:[#allocation2] sm:$0xff] }
  0x15   :  { %325 = vmatpush.msra.mxu2 %v457_v9  ;;  %v122_v29 = vand.u32 4294901760, %v121_v24  ;;  %v100_v30 = vsub.f32 %v98_v19, %v99_v25  ;;  %v128_v31 = vand.u32 4294901760, %v127_v26  ;;  %88 = vmatpush.msra.mxu0 %v457_v9  ;;  %v55_v62 = vld [vmem:[#allocation2 + $0x8] sm:$0xff] }
  0x16   :  { %v92_v33 = vsub.f32 %v90_v23, %v91_v28  ;;  %v134_v35 = vand.u32 4294901760, %v133_v27  ;;  %v140_v37 = vand.u32 4294901760, %v139_v32 }
  0x17   :  { %165 = vmatpush.msrb.mxu2 %v119_v12  ;;  %234 = vmatpush.msrb.mxu0 %v120_v18  ;;  %v101_v34 = vand.u32 4294901760, %v100_v30 }
  0x18   :  { %326 = vmatpush.msra.mxu3 %v122_v29  ;;  %123 = vmatpush.msra.mxu1 %v122_v29  ;;  %v93_v36 = vand.u32 4294901760, %v92_v33 }
  0x19   :  { %168 = vmatpush.msrb.mxu2 %v125_v14  ;;  %238 = vmatpush.msrb.mxu0 %v126_v20 }
  0x1a   :  { %102 = vmatmul.f32.vlgmr.msra.gmra.mxu2 %v101_v34  ;;  %327 = vmatpush.msra.mxu3 %v128_v31 }
  0x1b   :  { %171 = vmatpush.msrb.mxu2 %v131_v15  ;;  %129 = vmatpush.msra.mxu1 %v128_v31 }
  0x1c   :  { %328 = vmatpush.msra.mxu3 %v134_v35  ;;  %94 = vmatmul.f32.vlgmr.msra.gmra.mxu0 %v93_v36 }
  0x1d   :  { %174 = vmatpush.msrb.mxu2 %v137_v16  ;;  %135 = vmatpush.msra.mxu1 %v134_v35 }
  0x1e   :  { %329 = vmatpush.msra.mxu3 %v140_v37  ;;  %242 = vmatpush.msrb.mxu0 %v132_v21 }
  0x1f   :  { %147 = vmatmul.f32.vlgmr.msra.gmra.mxu3 %v461_v13  ;;  %141 = vmatpush.msra.mxu1 %v140_v37 }
  0x20   :  { %199 = vmatpush.msrb.mxu3 %v81_v3  ;;  %143 = vmatmul.f32.vlgmr.msra.gmra.mxu1 %v89_v17 }
  0x21   :  { %269 = vmatpush.msrb.mxu1 %v81_v3  ;;  %246 = vmatpush.msrb.mxu0 %v138_v22 }
  0x22   :  { %177 = vmatmul.f32.vlgmr.msrb.gmra.mxu2 %v90_v23  ;;  %201 = vmatpush.msrb.mxu3 %v453_v4 }
  0x23   :  { %271 = vmatpush.msrb.mxu1 %v453_v4 }
  0x24   :  { %203 = vmatpush.msrb.mxu3 %v455_v5  ;;  %248 = vmatmul.f32.vlgmr.msrb.gmra.mxu0 %v89_v17 }
  0x25   :  { %273 = vmatpush.msrb.mxu1 %v455_v5 }
  0x26   :  { %205 = vmatpush.msrb.mxu3 %v457_v9 }
  0x27   :  { %209 = vmatmul.f32.vlgmr.msrb.gmra.mxu3 %v91_v28  ;;  %275 = vmatpush.msrb.mxu1 %v457_v9 }
  0x28   :  { %277 = vmatmul.f32.vlgmr.msrb.gmra.mxu1 %v89_v17 }
  0x2a   :  { %182 = vmatmul.f32.gmra.mxu2 %v98_v19 }
  0x2c   :  { %252 = vmatmul.f32.gmra.mxu0 %v461_v13 }
  0x2f   :  { %215 = vmatmul.f32.gmra.mxu3 %v99_v25 }
  0x30   :  { %281 = vmatmul.f32.gmra.mxu1 %v461_v13 }
  0x99   :  { %v95_v40 = vpop.f32.mrf.mxu0 }
  0x9d   :  { %v103_v39 = vpop.f32.mrf.mxu2  ;;  %v144_v42 = vpop.f32.mrf.mxu1 }
  0x9e   :  { %v145_v43 = vadd.f32 %v144_v42, %v95_v40 }
  0xa1   :  { %v249_v45 = vpop.f32.mrf.mxu0 }
  0xa2   :  { %v148_v41 = vpop.f32.mrf.mxu3 }
  0xa3   :  { %v149_v53 = vadd.f32 %v148_v41, %v103_v39 }
  0xa5   :  { %v178_v44 = vpop.f32.mrf.mxu2  ;;  %v278_v48 = vpop.f32.mrf.mxu1 }
  0xa6   :  { %v179_v46 = vadd.f32 %v178_v44, %v145_v43 }
  0xa9   :  { %v253_v58 = vpop.f32.mrf.mxu0 }
  0xaa   :  { %v210_v47 = vpop.f32.mrf.mxu3 }
  0xab   :  { %v211_v49 = vadd.f32 %v210_v47, %v179_v46 }
  0xad   :  { %v250_v50 = vadd.f32 %v249_v45, %v211_v49  ;;  %v183_v51 = vpop.f32.mrf.mxu2  ;;  %v282_v60 = vpop.f32.mrf.mxu1 }
  0xae   :  { %v184_v55 = vadd.f32 %v183_v51, %v149_v53 }
  0xaf   :  { %v279_v54 = vadd.f32 %v278_v48, %v250_v50 }
  0xb1   :  { %v285_v56 = vadd.f32 %v279_v54, %v54_v52 }
  0xb2   :  { %v216_v57 = vpop.f32.mrf.mxu3 }
  0xb3   :  { %287 = vst.msk [vmem:[#allocation2] sm:$0xff] %vm51_vm0, %v285_v56  ;;  %v217_v59 = vadd.f32 %v216_v57, %v184_v55 }
  0xb5   :  { %v254_v61 = vadd.f32 %v253_v58, %v217_v59 }
  0xb7   :  { %v283_v63 = vadd.f32 %v282_v60, %v254_v61 }
  0xb9   :  { %v286_v1 = vadd.f32 %v283_v63, %v55_v62 }
  0xba   :  { %v292_v2 = vld [vmem:[#allocation2] sm:$0xff] }
  0xbb   :  { %288 = vst.msk [vmem:[#allocation2 + $0x8] sm:$0xff] %vm51_vm0, %v286_v1  ;;  %v298_v3 = vadd.f32 %v336_v0, %v292_v2 }
  0xbd   :  { %300 = vst.msk [vmem:[#allocation8] sm:$0xff] %vm51_vm0, %v298_v3 }
  0xc2   :  { %v293_v4 = vld [vmem:[#allocation2 + $0x8] sm:$0xff] }
  0xc3   :  { %v299_v5 = vadd.f32 %v336_v0, %v293_v4 }
  0xc5   :  { %301 = vst.msk [vmem:[#allocation8 + $0x8] sm:$0xff] %vm51_vm0, %v299_v5 }
  0xc6   :  { %314 = dma.vmem_to_hbm [thread:$0]  %s307_s25, 256, %s309_s28, [#allocation5], %s416_s20, %s416_s20, %s417_s21  }
  0xc7   :  { %413 = dma.done.wait [#allocation5], 256  }
  0xc8   :  { %414 = vsyncadd [#allocation5], 4294967040 }
  0xc9   :  { %319 = vsyncpa [#allocation4], 1 }
  0xca   :  { %320 = vsyncpa [#allocation7], 1 }
  0xcb   :  { %321 = vsyncpa [#allocation5], 1 }

</bundles_post_ra>
